<compile_context>
chip_gen: v6e
topology: v6e:2x2x1
jax: 0.10.0
libtpu: 0.0.40
codegen_flags: <defaults>
</compile_context>

<pallas_src>
import jax
import jax.numpy as jnp
from jax.experimental import pallas as pl
from jax.experimental.pallas import tpu as pltpu


def _pinn_kernel(tbT_ref, w1_ref, b1_ref, w2_ref, b2_ref, out_ref):
    """One batch tile of the PINN forward, carried in (feature, batch) layout.

    tbT_ref : (in_dim, TILE_N)   input points, batch on the lane axis
    w1_ref  : (hidden, in_dim)   fc1.weight (PyTorch layout), VMEM-resident
    b1_ref  : (hidden, 1)        fc1.bias
    w2_ref  : (out_dim, hidden)  fc2.weight (PyTorch layout), VMEM-resident
    b2_ref  : (out_dim, 1)       fc2.bias
    out_ref : (out_dim, TILE_N)  output tile, batch on the lane axis
    """
    in_dim = tbT_ref.shape[0]
    tbT = tbT_ref[...]                                  # (in_dim, TILE_N)
    t_row = tbT[0:1, :]                                 # (1, TILE_N)

    # fc1: K = in_dim (=2) is far too small for the MXU -> VPU broadcast FMA.
    w1 = w1_ref[...]                                    # (hidden, in_dim)
    acc = w1[:, 0:1] * tbT[0:1, :]                      # (hidden, TILE_N)
    for k in range(1, in_dim):                          # static, fully unrolled
        acc = acc + w1[:, k:k + 1] * tbT[k:k + 1, :]
    h = jnp.tanh(acc + b1_ref[...])                     # (hidden, TILE_N), EUP

    # fc2 on the MXU; batch on the result's lane axis -> lane-dense store.
    out = jnp.dot(w2_ref[...], h, preferred_element_type=jnp.float32)
    out = out + b2_ref[...]                             # (out_dim, TILE_N)

    # Hard-BC factor (1 - exp(-t)), broadcast over out_dim rows.
    # Kept exactly as in the PyTorch module (not expm1) to match semantics.
    out_ref[...] = (1.0 - jnp.exp(-t_row)) * out


def _round_up(x, m):
    return (x + m - 1) // m * m


def pinn_forward(tb, w1, b1, w2, b2, *, max_tile_n=2048):
    """PINN forward.  tb: (N, in_dim) (or (N,)/scalar, mirroring PyTorch dim handling).

    Note: as in the PyTorch module, the scalar/1-D promotion only makes sense
    if the resulting feature dim matches fc1's in_dim.
    """
    tb = jnp.asarray(tb, jnp.float32)
    if tb.ndim == 0:
        tb = tb[None, None]
    elif tb.ndim == 1:
        tb = tb[:, None]

    n, in_dim = tb.shape
    hidden = w1.shape[0]
    out_dim = w2.shape[0]

    w1 = jnp.asarray(w1, jnp.float32)
    w2 = jnp.asarray(w2, jnp.float32)
    b1c = jnp.asarray(b1, jnp.float32).reshape(hidden, 1)
    b2c = jnp.asarray(b2, jnp.float32).reshape(out_dim, 1)

    # Lane-dense layout: batch on the last (lane) axis, padded to a tile multiple.
    tile_n = min(max_tile_n, _round_up(n, 128))
    n_pad = _round_up(n, tile_n)
    tbT = jnp.pad(tb.T, ((0, 0), (0, n_pad - n)))       # (in_dim, n_pad)

    outT = pl.pallas_call(
        _pinn_kernel,
        out_shape=jax.ShapeDtypeStruct((out_dim, n_pad), jnp.float32),
        grid=(n_pad // tile_n,),
        in_specs=[
            pl.BlockSpec((in_dim, tile_n), lambda i: (0, i)),   # tb tile (pipelined)
            pl.BlockSpec((hidden, in_dim), lambda i: (0, 0)),   # w1 resident
            pl.BlockSpec((hidden, 1), lambda i: (0, 0)),        # b1 resident
            pl.BlockSpec((out_dim, hidden), lambda i: (0, 0)),  # w2 resident
            pl.BlockSpec((out_dim, 1), lambda i: (0, 0)),       # b2 resident
        ],
        out_specs=pl.BlockSpec((out_dim, tile_n), lambda i: (0, i)),
        compiler_params=pltpu.CompilerParams(
            dimension_semantics=("parallel",),
            vmem_limit_bytes=32 * 1024 * 1024,
        ),
    )(tbT, w1, b1c, w2, b2c)

    return outT[:, :n].T                                # (N, out_dim)


def init_params(key, in_dim=2, hidden=100, out_dim=5):
    """Deterministic synthetic init matching nn.Linear shapes (PyTorch layout)."""
    k1, k2, k3, k4 = jax.random.split(key, 4)
    s1 = 1.0 / jnp.sqrt(in_dim)
    s2 = 1.0 / jnp.sqrt(hidden)
    w1 = jax.random.uniform(k1, (hidden, in_dim), jnp.float32, -s1, s1)
    b1 = jax.random.uniform(k2, (hidden,), jnp.float32, -s1, s1)
    w2 = jax.random.uniform(k3, (out_dim, hidden), jnp.float32, -s2, s2)
    b2 = jax.random.uniform(k4, (out_dim,), jnp.float32, -s2, s2)
    return w1, b1, w2, b2


def pinn_reference(tb, w1, b1, w2, b2):
    """Pure-JAX reference for correctness check (PyTorch semantics)."""
    tb = jnp.asarray(tb, jnp.float32)
    if tb.ndim == 0:
        tb = tb[None, None]
    elif tb.ndim == 1:
        tb = tb[:, None]
    t = tb[:, 0:1]
    h = jnp.tanh(tb @ w1.T + b1[None, :])
    out = h @ w2.T + b2[None, :]
    return (1.0 - jnp.exp(-t)) * out


if __name__ == "__main__":
    key = jax.random.PRNGKey(0)
    k_params, k_data = jax.random.split(key)

    in_dim, hidden, out_dim = 2, 100, 5
    w1, b1, w2, b2 = init_params(k_params, in_dim, hidden, out_dim)

    # Small batch + a ragged (non-multiple-of-128) batch to exercise padding/tiling.
    for batch in (8, 300):
        k_data, k_use = jax.random.split(k_data)
        tb = jax.random.uniform(k_use, (batch, in_dim), jnp.float32, 0.0, 1.0)

        out = jax.block_until_ready(pinn_forward(tb, w1, b1, w2, b2))
        ref = pinn_reference(tb, w1, b1, w2, b2)

        assert out.shape == (batch, out_dim), out.shape
        assert jnp.allclose(out, ref, atol=1e-5, rtol=1e-5), "mismatch vs reference"

    print("KERNEL_OK")
</pallas_src>

<mosaic_0001>
module attributes {stable_mosaic.version = 11 : i64} {
  func.func @_pinn_kernel(%arg0: i32, %arg1: memref<2x128xf32, #tpu.memory_space<vmem>>, %arg2: memref<100x2xf32, #tpu.memory_space<vmem>>, %arg3: memref<100x1xf32, #tpu.memory_space<vmem>>, %arg4: memref<5x100xf32, #tpu.memory_space<vmem>>, %arg5: memref<5x1xf32, #tpu.memory_space<vmem>>, %arg6: memref<5x128xf32, #tpu.memory_space<vmem>>) attributes {dimension_semantics = [#tpu.dimension_semantics<parallel>], iteration_bounds = array<i64: 1>, scalar_prefetch = 0 : i64, scratch_operands = 0 : i64, tpu.core_type = #tpu.core_type<tc>, window_params = [{transform_indices = @transform_0, window_bounds = array<i64: 2, 128>}, {pipeline_mode = #tpu.pipeline_mode<synchronous>, transform_indices = @transform_1, window_bounds = array<i64: 100, 2>}, {pipeline_mode = #tpu.pipeline_mode<synchronous>, transform_indices = @transform_2, window_bounds = array<i64: 100, 1>}, {pipeline_mode = #tpu.pipeline_mode<synchronous>, transform_indices = @transform_3, window_bounds = array<i64: 5, 100>}, {pipeline_mode = #tpu.pipeline_mode<synchronous>, transform_indices = @transform_4, window_bounds = array<i64: 5, 1>}, {transform_indices = @transform_5, window_bounds = array<i64: 5, 128>}]} {
    %c0 = arith.constant 0 : index
    %c0_0 = arith.constant 0 : index
    %0 = vector.load %arg1[%c0, %c0_0] : memref<2x128xf32, #tpu.memory_space<vmem>>, vector<2x128xf32>
    %1 = vector.extract_strided_slice %0 {offsets = [0, 0], sizes = [1, 128], strides = [1, 1]} : vector<2x128xf32> to vector<1x128xf32>
    %c0_1 = arith.constant 0 : index
    %c0_2 = arith.constant 0 : index
    %2 = vector.load %arg2[%c0_1, %c0_2] : memref<100x2xf32, #tpu.memory_space<vmem>>, vector<100x2xf32>
    %3 = vector.extract_strided_slice %2 {offsets = [0, 0], sizes = [100, 1], strides = [1, 1]} : vector<100x2xf32> to vector<100x1xf32>
    %4 = vector.extract_strided_slice %0 {offsets = [0, 0], sizes = [1, 128], strides = [1, 1]} : vector<2x128xf32> to vector<1x128xf32>
    %5 = vector.broadcast %3 : vector<100x1xf32> to vector<100x128xf32>
    %6 = vector.broadcast %4 : vector<1x128xf32> to vector<100x128xf32>
    %7 = arith.mulf %5, %6 : vector<100x128xf32>
    %8 = vector.extract_strided_slice %2 {offsets = [0, 1], sizes = [100, 1], strides = [1, 1]} : vector<100x2xf32> to vector<100x1xf32>
    %9 = vector.extract_strided_slice %0 {offsets = [1, 0], sizes = [1, 128], strides = [1, 1]} : vector<2x128xf32> to vector<1x128xf32>
    %10 = vector.broadcast %8 : vector<100x1xf32> to vector<100x128xf32>
    %11 = vector.broadcast %9 : vector<1x128xf32> to vector<100x128xf32>
    %12 = arith.mulf %10, %11 : vector<100x128xf32>
    %13 = arith.addf %7, %12 : vector<100x128xf32>
    %c0_3 = arith.constant 0 : index
    %c0_4 = arith.constant 0 : index
    %14 = vector.load %arg3[%c0_3, %c0_4] : memref<100x1xf32, #tpu.memory_space<vmem>>, vector<100x1xf32>
    %15 = vector.broadcast %14 : vector<100x1xf32> to vector<100x128xf32>
    %16 = arith.addf %13, %15 : vector<100x128xf32>
    %17 = math.tanh %16 : vector<100x128xf32>
    %c0_5 = arith.constant 0 : index
    %c0_6 = arith.constant 0 : index
    %18 = vector.load %arg4[%c0_5, %c0_6] : memref<5x100xf32, #tpu.memory_space<vmem>>, vector<5x100xf32>
    %cst = arith.constant dense<0.000000e+00> : vector<5x128xf32>
    %19 = tpu.matmul %18, %17, %cst {dimension_numbers = #tpu.dot_dimension_numbers<[1], [0], [0], [1], [0, 0, 1, 1], [], []>} : vector<5x100xf32>, vector<100x128xf32>, vector<5x128xf32> -> vector<5x128xf32>
    %c0_7 = arith.constant 0 : index
    %c0_8 = arith.constant 0 : index
    %20 = vector.load %arg5[%c0_7, %c0_8] : memref<5x1xf32, #tpu.memory_space<vmem>>, vector<5x1xf32>
    %21 = vector.broadcast %20 : vector<5x1xf32> to vector<5x128xf32>
    %22 = arith.addf %19, %21 : vector<5x128xf32>
    %cst_9 = arith.constant 0.000000e+00 : f32
    %23 = vector.broadcast %cst_9 : f32 to vector<1x128xf32>
    %24 = arith.subf %23, %1 : vector<1x128xf32>
    %25 = math.exp %24 : vector<1x128xf32>
    %cst_10 = arith.constant 1.000000e+00 : f32
    %26 = vector.broadcast %cst_10 : f32 to vector<1x128xf32>
    %27 = arith.subf %26, %25 : vector<1x128xf32>
    %28 = vector.broadcast %27 : vector<1x128xf32> to vector<5x128xf32>
    %29 = arith.mulf %28, %22 : vector<5x128xf32>
    %c0_11 = arith.constant 0 : index
    %c0_12 = arith.constant 0 : index
    %30 = vector.load %arg6[%c0_11, %c0_12] : memref<5x128xf32, #tpu.memory_space<vmem>>, vector<5x128xf32>
    tpu.vector_store %arg6[%c0_11, %c0_12], %29 {strides = array<i32>} : memref<5x128xf32, #tpu.memory_space<vmem>>, vector<5x128xf32>,
    return
  }
  func.func @transform_0(%arg0: i32) -> (i32, i32) {
    %c0_i32 = arith.constant 0 : i32
    %c0_i32_0 = arith.constant 0 : i32
    return %c0_i32, %arg0 : i32, i32
  }
  func.func @transform_1(%arg0: i32) -> (i32, i32) {
    %c0_i32 = arith.constant 0 : i32
    %c0_i32_0 = arith.constant 0 : i32
    %c0_i32_1 = arith.constant 0 : i32
    return %c0_i32, %c0_i32_0 : i32, i32
  }
  func.func @transform_2(%arg0: i32) -> (i32, i32) {
    %c0_i32 = arith.constant 0 : i32
    %c0_i32_0 = arith.constant 0 : i32
    %c0_i32_1 = arith.constant 0 : i32
    return %c0_i32, %c0_i32_0 : i32, i32
  }
  func.func @transform_3(%arg0: i32) -> (i32, i32) {
    %c0_i32 = arith.constant 0 : i32
    %c0_i32_0 = arith.constant 0 : i32
    %c0_i32_1 = arith.constant 0 : i32
    return %c0_i32, %c0_i32_0 : i32, i32
  }
  func.func @transform_4(%arg0: i32) -> (i32, i32) {
    %c0_i32 = arith.constant 0 : i32
    %c0_i32_0 = arith.constant 0 : i32
    %c0_i32_1 = arith.constant 0 : i32
    return %c0_i32, %c0_i32_0 : i32, i32
  }
  func.func @transform_5(%arg0: i32) -> (i32, i32) {
    %c0_i32 = arith.constant 0 : i32
    %c0_i32_0 = arith.constant 0 : i32
    return %c0_i32, %arg0 : i32, i32
  }
}

</mosaic_0001>

<bundles_post_ra>
// kernel: tpu_custom_call.1
= control target key start
LH: loop header
LB: loop body
LE: loop exit
PB: predicated region body
PF: predicated region fallthrough
CT: control target
= control target key end

     0   :  { %v529_v2 = vmov 1   ;;  %v530_v3 = vmov 0   ;;  %s734_s0 = inlined_call_operand.vmem [shape: f32[2,128], index: 0, kind: input, shape index: {}]   ;;  %s735_s1 = inlined_call_operand.vmem [shape: f32[100,2], index: 1, kind: input, shape index: {}]   ;;  %s736_s2 = inlined_call_operand.vmem [shape: f32[100,1], index: 2, kind: input, shape index: {}]   ;;  %s737_s3 = inlined_call_operand.vmem [shape: f32[5,100], index: 3, kind: input, shape index: {}]   ;;  %s738_s4 = inlined_call_operand.vmem [shape: f32[5,1], index: 4, kind: input, shape index: {}]   ;;  %s739_s5 = inlined_call_operand.hbm [shape: f32[5,128], index: 5, kind: output, shape index: {}]  }
   0x1   :  { %v34_v0 = vld [vmem:[%s735_s1 + $0x60] sm:$0xf]  ;;  %v33_v1 = vld [vmem:[%s735_s1 + $0x58] sm:$0xff]  ;;  %462 = vset.pattern.permute.xlu0 %v529_v2  ;;  %463 = vset.pattern.permute.xlu1 %v530_v3  ;;  %v32_v4 = vld [vmem:[%s735_s1 + $0x50] sm:$0xff] }
   0x2   :  { %166 = vperm.xlu0 %462, %v34_v0   ;;  %92 = vperm.xlu1 %463, %v33_v1   ;;  %v29_v5 = vld [vmem:[%s735_s1 + $0x38] sm:$0xff] }
   0x6   :  { %464 = vset.pattern.permute.xlu1 %v529_v2  ;;  %158 = vperm.xlu0 %462, %v32_v4  }
   0x7   :  { %162 = vperm.xlu1 %464, %v33_v1  }
   0x8   :  { %10 = vsyncpa [#allocation3], 0  ;;  %v28_v6 = vld [vmem:[%s735_s1 + $0x30] sm:$0xff]  ;;  %v211_v7 = vld [vmem:[%s736_s2 + $0x60] sm:$0xf]  ;;  %v531_v16 = vmov 0.0   ;;  %v100_v35 = vlaneseq }
   0x9   :  { %v25_v8 = vld [vmem:[%s735_s1 + $0x18] sm:$0xff]  ;;  %v31_v9 = vld [vmem:[%s735_s1 + $0x48] sm:$0xff]  ;;  %v24_v10 = vld [vmem:[%s735_s1 + $0x10] sm:$0xff]  ;;  %428 = vmatprep.subr.mxu0 %v531_v16  ;;  %vm532_vm0 = vmmov 0   ;;  %vm314_vm1 = vcmask 1043456   ;;  %vm310_vm2 = vcmask 818176  }
   0xa   :  { %146 = vperm.xlu0 %462, %v29_v5   ;;  %v210_v11 = vld [vmem:[%s736_s2 + $0x58] sm:$0xff]  ;;  %v30_v12 = vld [vmem:[%s735_s1 + $0x40] sm:$0xff]  ;;  %v209_v13 = vld [vmem:[%s736_s2 + $0x50] sm:$0xff]  ;;  %454 = vmatprep.mubr.msk.f32.mxu0 %vm532_vm0, %v531_v16  ;;  %v664_v38 = vshrl.u32 %v100_v35, 7  ;;  %s533_s22 = smov [#allocation2]  }
   0xb   :  { %465 = vset.pattern.permute.xlu1 %v530_v3  ;;  %v208_v14 = vld [vmem:[%s736_s2 + $0x48] sm:$0xff]  ;;  %v26_v17 = vld [vmem:[%s735_s1 + $0x20] sm:$0xff]  ;;  %v205_v19 = vld [vmem:[%s736_s2 + $0x30] sm:$0xff]  ;;  %s404_s23 = sshll.u32 %s533_s22, 4  ;;  %s405_s23 = int_to_ptr.vmem [resolvable:$true] %s404_s23 }
   0xc   :  { %87 = vperm.xlu1 %465, %v32_v4   ;;  %v27_v15 = vld [vmem:[%s735_s1 + $0x28] sm:$0xff]  ;;  %v207_v18 = vld [vmem:[%s736_s2 + $0x40] sm:$0xff]  ;;  %v206_v21 = vld [vmem:[%s736_s2 + $0x38] sm:$0xff]  ;;  %v171_v40 = vsub.s32 1, %v664_v38  ;;  %v102_v42 = vsub.s32 0, %v664_v38  ;;  %p512_p1 = scmp.lt.s32.totalorder %s405_s23, %s405_s23 }
   0xd   :  { %v23_v20 = vld [vmem:[%s735_s1 + $0x8] sm:$0xff]  ;;  %v22_v22 = vld [vmem:[%s735_s1] sm:$0xff]  ;;  %v201_v23 = vld [vmem:[%s736_s2 + $0x10] sm:$0xff] }
   0xe   :  { %142 = vperm.xlu0 %462, %v28_v6   ;;  %v199_v24 = vld [vmem:[%s736_s2] sm:$0xff]  ;;  %v204_v25 = vld [vmem:[%s736_s2 + $0x28] sm:$0xff]  ;;  %v202_v27 = vld [vmem:[%s736_s2 + $0x18] sm:$0xff] }
   0xf   :  { %v203_v26 = vld [vmem:[%s736_s2 + $0x20] sm:$0xff]  ;;  %v200_v28 = vld [vmem:[%s736_s2 + $0x8] sm:$0xff] }
  0x10   :  { %274 = vperm.xlu1 %465, %v211_v7   ;;  %v304_v29 = vld [vmem:[%s738_s4] sm:$0x1f] }
  0x11   :  { %v673_v43 = vld [vmem:[%s734_s0] sm:$0x3] }
  0x12   :  { %130 = vperm.xlu0 %462, %v25_v8   ;;  %v676_v45 = vrot.slane %v673_v43, %v171_v40  ;;  %v683_v47 = vrot.slane %v673_v43, %v102_v42 }
  0x14   :  { %466 = vset.pattern.permute.xlu1 %v529_v2 }
  0x15   :  { %154 = vperm.xlu1 %466, %v31_v9  }
  0x16   :  { %126 = vperm.xlu0 %462, %v24_v10  }
  0x19   :  { %467 = vset.pattern.permute.xlu1 %v530_v3 }
  0x1a   :  { %269 = vperm.xlu1 %467, %v210_v11   ;;  %474 = vset.pattern.permute.xlu0 %v530_v3 }
  0x1b   :  { %97 = vperm.xlu0 %474, %v34_v0  }
  0x1e   :  { %468 = vset.pattern.permute.xlu1 %v529_v2 }
  0x1f   :  { %150 = vperm.xlu1 %468, %v30_v12   ;;  %82 = vperm.xlu0 %474, %v31_v9  }
  0x23   :  { %469 = vset.pattern.permute.xlu1 %v530_v3  ;;  %77 = vperm.xlu0 %474, %v30_v12  }
  0x24   :  { %72 = vperm.xlu1 %469, %v29_v5  }
  0x27   :  { %264 = vperm.xlu0 %474, %v209_v13  }
  0x28   :  { %259 = vperm.xlu1 %469, %v208_v14  }
  0x2b   :  { %62 = vperm.xlu0 %474, %v27_v15  }
  0x2c   :  { %67 = vperm.xlu1 %469, %v28_v6  }
  0x2f   :  { %57 = vperm.xlu0 %474, %v26_v17  }
  0x30   :  { %254 = vperm.xlu1 %469, %v207_v18  }
  0x33   :  { %244 = vperm.xlu0 %474, %v205_v19  }
  0x34   :  { %470 = vset.pattern.permute.xlu1 %v529_v2 }
  0x35   :  { %138 = vperm.xlu1 %470, %v27_v15  }
  0x37   :  { %42 = vperm.xlu0 %474, %v23_v20  }
  0x39   :  { %471 = vset.pattern.permute.xlu1 %v530_v3 }
  0x3a   :  { %249 = vperm.xlu1 %471, %v206_v21  }
  0x3b   :  { %37 = vperm.xlu0 %474, %v22_v22  }
  0x3e   :  { %472 = vset.pattern.permute.xlu1 %v529_v2 }
  0x3f   :  { %134 = vperm.xlu1 %472, %v26_v17   ;;  %224 = vperm.xlu0 %474, %v201_v23  }
  0x43   :  { %473 = vset.pattern.permute.xlu1 %v530_v3  ;;  %214 = vperm.xlu0 %474, %v199_v24  }
  0x44   :  { %52 = vperm.xlu1 %473, %v25_v8  }
  0x48   :  { %239 = vperm.xlu1 %473, %v204_v25  }
  0x4c   :  { %47 = vperm.xlu1 %473, %v24_v10  }
  0x50   :  { %234 = vperm.xlu1 %473, %v203_v26  }
  0x54   :  { %475 = vset.pattern.permute.xlu1 %v529_v2 }
  0x55   :  { %122 = vperm.xlu1 %475, %v23_v20  }
  0x59   :  { %476 = vset.pattern.permute.xlu1 %v530_v3 }
  0x5a   :  { %229 = vperm.xlu1 %476, %v202_v27  }
  0x5e   :  { %477 = vset.pattern.permute.xlu1 %v529_v2 }
  0x5f   :  { %118 = vperm.xlu1 %477, %v22_v22  }
  0x63   :  { %478 = vset.pattern.permute.xlu1 %v530_v3 }
  0x64   :  { %219 = vperm.xlu1 %478, %v200_v28  }
  0x68   :  { %307 = vperm.xlu1 %478, %v304_v29  }
  0x7d   :  { %v93_v30 = vpop.permute.xlu1 %92  ;;  %v167_v31 = vpop.permute.xlu0 %166 }
  0x7e   :  { %v185_v48 = vmul.f32 %v676_v45, %v167_v31  ;;  %v115_v52 = vmul.f32 %v683_v47, %v93_v30 }
  0x81   :  { %v159_v32 = vpop.permute.xlu0 %158 }
  0x82   :  { %v163_v33 = vpop.permute.xlu1 %162  ;;  %v183_v60 = vmul.f32 %v676_v45, %v159_v32 }
  0x83   :  { %v184_v49 = vmul.f32 %v676_v45, %v163_v33 }
  0x85   :  { %v147_v34 = vpop.permute.xlu0 %146  ;;  %v197_v54 = vadd.f32 %v184_v49, %v115_v52 }
  0x86   :  { %v180_v19 = vmul.f32 %v676_v45, %v147_v34 }
  0x87   :  { %v88_v36 = vpop.permute.xlu1 %87 }
  0x88   :  { %v114_v61 = vmul.f32 %v683_v47, %v88_v36 }
  0x89   :  { %v143_v37 = vpop.permute.xlu0 %142 }
  0x8a   :  { %v196_v2 = vadd.f32 %v183_v60, %v114_v61  ;;  %v179_v24 = vmul.f32 %v676_v45, %v143_v37 }
  0x8b   :  { %v275_v39 = vpop.permute.xlu1 %274 }
  0x8d   :  { %v667_v41 = vpop.permute.xlu0 %130 }
  0x8e   :  { %v176_v61 = vmul.f32 %v676_v45, %v667_v41 }
  0x90   :  { %v155_v44 = vpop.permute.xlu1 %154 }
  0x91   :  { %v678_v46 = vpop.permute.xlu0 %126  ;;  %v182_v1 = vmul.f32 %v676_v45, %v155_v44 }
  0x95   :  { %v270_v50 = vpop.permute.xlu1 %269 }
  0x96   :  { %v98_v51 = vpop.permute.xlu0 %97  ;;  %v288_v58 = vadd.f32 %v270_v50, %v197_v54 }
  0x97   :  { %v116_v53 = vmul.f32 %v683_v47, %v98_v51 }
  0x99   :  { %v198_v55 = vadd.f32 %v185_v48, %v116_v53 }
  0x9a   :  { %v151_v56 = vpop.permute.xlu1 %150  ;;  %v83_v57 = vpop.permute.xlu0 %82 }
  0x9b   :  { %v289_v59 = vadd.f32 %v275_v39, %v198_v55  ;;  %v113_v62 = vmul.f32 %v683_v47, %v83_v57  ;;  %v181_v11 = vmul.f32 %v676_v45, %v151_v56 }
  0x9d   :  { %479 = vtanh.f32 %v289_v59  ;;  %v195_v4 = vadd.f32 %v182_v1, %v113_v62 }
  0x9e   :  { %v78_v63 = vpop.permute.xlu0 %77  ;;  %481 = vtanh.f32 %v288_v58  ;;  %v175_v58 = vmul.f32 %v676_v45, %v678_v46 }
  0x9f   :  { %v73_v0 = vpop.permute.xlu1 %72  ;;  %v112_v8 = vmul.f32 %v683_v47, %v78_v63 }
  0xa0   :  { %v111_v20 = vmul.f32 %v683_v47, %v73_v0 }
  0xa1   :  { %v194_v13 = vadd.f32 %v181_v11, %v112_v8 }
  0xa2   :  { %v265_v3 = vpop.permute.xlu0 %264  ;;  %v193_v28 = vadd.f32 %v180_v19, %v111_v20  ;;  %v388_v19 = vsub.f32 0.0, %v673_v43 }
  0xa3   :  { %v287_v5 = vadd.f32 %v265_v3, %v196_v2  ;;  %v260_v6 = vpop.permute.xlu1 %259 }
  0xa4   :  { %v286_v7 = vadd.f32 %v260_v6, %v195_v4  ;;  %v389_v20 = vmul.f32 1.442695, %v388_v19 }
  0xa5   :  { %483 = vtanh.f32 %v287_v5 }
  0xa6   :  { %485 = vtanh.f32 %v286_v7  ;;  %v63_v9 = vpop.permute.xlu0 %62 }
  0xa7   :  { %v68_v10 = vpop.permute.xlu1 %67  ;;  %v109_v34 = vmul.f32 %v683_v47, %v63_v9 }
  0xa8   :  { %v110_v21 = vmul.f32 %v683_v47, %v68_v10 }
  0xaa   :  { %v480_v12 = vpop.eup %479  ;;  %v58_v18 = vpop.permute.xlu0 %57  ;;  %v192_v27 = vadd.f32 %v179_v24, %v110_v21 }
  0xab   :  { %v255_v14 = vpop.permute.xlu1 %254  ;;  %429 = vmatpush3.msk.msra.mxu0 %vm314_vm1, %v480_v12  ;;  %v482_v15 = vpop.eup %481  ;;  %v108_v48 = vmul.f32 %v683_v47, %v58_v18 }
  0xac   :  { %v285_v17 = vadd.f32 %v255_v14, %v194_v13  ;;  %430 = vmatprep.subr.mxu0 %v531_v16 }
  0xad   :  { %431 = vmatpush3.msra.mxu0 %v482_v15 }
  0xae   :  { %487 = vtanh.f32 %v285_v17  ;;  %432 = vmatprep.subr.mxu0 %v531_v16  ;;  %v245_v26 = vpop.permute.xlu0 %244 }
  0xaf   :  { %v283_v30 = vadd.f32 %v245_v26, %v192_v27 }
  0xb0   :  { %v139_v22 = vpop.permute.xlu1 %138 }
  0xb1   :  { %v178_v35 = vmul.f32 %v676_v45, %v139_v22 }
  0xb2   :  { %v484_v23 = vpop.eup %483  ;;  %v43_v52 = vpop.permute.xlu0 %42 }
  0xb3   :  { %v486_v25 = vpop.eup %485  ;;  %433 = vmatpush3.msra.mxu0 %v484_v23  ;;  %v191_v37 = vadd.f32 %v178_v35, %v109_v34  ;;  %v105_v8 = vmul.f32 %v683_v47, %v43_v52 }
  0xb4   :  { %434 = vmatprep.subr.mxu0 %v531_v16 }
  0xb5   :  { %v250_v29 = vpop.permute.xlu1 %249  ;;  %435 = vmatpush3.msra.mxu0 %v486_v25 }
  0xb6   :  { %v284_v31 = vadd.f32 %v250_v29, %v193_v28  ;;  %436 = vmatprep.subr.mxu0 %v531_v16  ;;  %v38_v57 = vpop.permute.xlu0 %37 }
  0xb7   :  { %v104_v6 = vmul.f32 %v683_v47, %v38_v57 }
  0xb8   :  { %489 = vtanh.f32 %v284_v31 }
  0xb9   :  { %491 = vtanh.f32 %v283_v30 }
  0xba   :  { %v135_v32 = vpop.permute.xlu1 %134  ;;  %v225_v1 = vpop.permute.xlu0 %224 }
  0xbb   :  { %v488_v33 = vpop.eup %487  ;;  %v177_v49 = vmul.f32 %v676_v45, %v135_v32 }
  0xbc   :  { %437 = vmatpush3.msra.mxu0 %v488_v33 }
  0xbd   :  { %438 = vmatprep.subr.mxu0 %v531_v16  ;;  %v190_v53 = vadd.f32 %v177_v49, %v108_v48 }
  0xbe   :  { %v215_v11 = vpop.permute.xlu0 %214 }
  0xbf   :  { %v53_v36 = vpop.permute.xlu1 %52 }
  0xc0   :  { %v107_v59 = vmul.f32 %v683_v47, %v53_v36 }
  0xc2   :  { %v189_v0 = vadd.f32 %v176_v61, %v107_v59 }
  0xc3   :  { %v240_v39 = vpop.permute.xlu1 %239 }
  0xc4   :  { %v282_v40 = vadd.f32 %v240_v39, %v191_v37 }
  0xc5   :  { %v490_v44 = vpop.eup %489 }
  0xc6   :  { %493 = vtanh.f32 %v282_v40  ;;  %439 = vmatpush3.msra.mxu0 %v490_v44  ;;  %v492_v50 = vpop.eup %491 }
  0xc7   :  { %v48_v51 = vpop.permute.xlu1 %47  ;;  %440 = vmatprep.subr.mxu0 %v531_v16 }
  0xc8   :  { %441 = vmatpush3.msra.mxu0 %v492_v50  ;;  %v106_v56 = vmul.f32 %v683_v47, %v48_v51  ;;  %v303_v47 = vld [vmem:[%s737_s3] sm:$0x1f]  ;;  %s507_s3 = scalar_lea.vmem %s405_s23, 128 }
  0xc9   :  { %442 = vmatprep.subr.mxu0 %v531_v16  ;;  %p508_p0 = scmp.ne.s32.totalorder %s405_s23, %s507_s3  ;;  %p513_p2 = scmp.lt.s32.totalorder %s507_s3, %s507_s3 }
  0xca   :  { %v188_v62 = vadd.f32 %v175_v58, %v106_v56 }
  0xcb   :  { %v235_v54 = vpop.permute.xlu1 %234  ;;  %p514_p3 = por %p513_p2, %p512_p1 }
  0xcc   :  { %v281_v55 = vadd.f32 %v235_v54, %v190_v53  ;;  %v279_v3 = vadd.f32 %v225_v1, %v188_v62 }
  0xcd   :  { %p515_p4 = pnand %p514_p3, %p508_p0 }
  0xce   :  { %495 = vtanh.f32 %v281_v55 }
  0xd0   :  { %v123_v60 = vpop.permute.xlu1 %122 }
  0xd1   :  { %v174_v46 = vmul.f32 %v676_v45, %v123_v60 }
  0xd3   :  { %v494_v63 = vpop.eup %493  ;;  %v187_v10 = vadd.f32 %v174_v46, %v105_v8 }
  0xd4   :  { %443 = vmatpush3.msra.mxu0 %v494_v63 }
  0xd5   :  { %v230_v2 = vpop.permute.xlu1 %229  ;;  %444 = vmatprep.subr.mxu0 %v531_v16 }
  0xd6   :  { %v280_v4 = vadd.f32 %v230_v2, %v189_v0 }
  0xd8   :  { %497 = vtanh.f32 %v280_v4 }
  0xd9   :  { %499 = vtanh.f32 %v279_v3 }
  0xda   :  { %v119_v5 = vpop.permute.xlu1 %118 }
  0xdb   :  { %v173_v7 = vmul.f32 %v676_v45, %v119_v5  ;;  %v496_v41 = vpop.eup %495 }
  0xdc   :  { %445 = vmatpush3.msra.mxu0 %v496_v41 }
  0xdd   :  { %v186_v9 = vadd.f32 %v173_v7, %v104_v6  ;;  %446 = vmatprep.subr.mxu0 %v531_v16 }
  0xdf   :  { %v220_v12 = vpop.permute.xlu1 %219  ;;  %v277_v13 = vadd.f32 %v215_v11, %v186_v9 }
  0xe0   :  { %v278_v14 = vadd.f32 %v220_v12, %v187_v10 }
  0xe2   :  { %501 = vtanh.f32 %v278_v14 }
  0xe3   :  { %503 = vtanh.f32 %v277_v13  ;;  %v308_v24 = vpop.permute.xlu1 %307 }
  0xe4   :  { %505 = vpow2.f32 %v389_v20 }
  0xe5   :  { %v498_v15 = vpop.eup %497 }
  0xe6   :  { %447 = vmatpush3.msra.mxu0 %v498_v15  ;;  %v500_v17 = vpop.eup %499 }
  0xe7   :  { %448 = vmatprep.subr.mxu0 %v531_v16 }
  0xe8   :  { %449 = vmatpush3.msra.mxu0 %v500_v17 }
  0xe9   :  { %450 = vmatprep.subr.mxu0 %v531_v16 }
  0xef   :  { %v502_v45 = vpop.eup %501 }
  0xf0   :  { %451 = vmatpush3.msra.mxu0 %v502_v45  ;;  %v504_v18 = vpop.eup %503 }
  0xf1   :  { %452 = vmatprep.subr.mxu0 %v531_v16  ;;  %v506_v21 = vpop.eup %505 }
  0xf2   :  { %453 = vmatpush3.msra.mxu0 %v504_v18  ;;  %v391_v22 = vsub.f32 1.0, %v506_v21 }
  0xf3   :  { %455 = vmatmul.mubr.msk.f32.vlgmr.msra.gmra.mxu0 %vm310_vm2, %v303_v47 }
  0xf4   :  { %v395_v23 = vrot.slane %v391_v22, %v102_v42 }
 0x1b3   :  { %v384_v25 = vpop.f32.mrf.mxu0 }
 0x1b4   :  { %v385_v26 = vadd.f32 %v384_v25, %v308_v24 }
 0x1b5   :  { %v456_v27 = vpop.f32.mrf.mxu0 }
 0x1b6   :  { %v396_v28 = vmul.f32 %v395_v23, %v385_v26 }
 0x1b8   :  { %397 = vst [vmem:[#allocation2] sm:$0x1f] %v396_v28 }
 0x1b9   :  { %518 = shalt.err (!%p515_p4)
}
 0x1ba   :  { %407 = dma.vmem_to_hbm [thread:$0]  %s405_s23, 128, %s739_s5, [#allocation3]  }
 0x1bb   :  { %527 = dma.done.wait [#allocation3], 128  }
 0x1bc   :  { %528 = vsyncadd [#allocation3], 4294967168 }
 0x1bd   :  { %411 = vsyncpa [#allocation3], 1 }

</bundles_post_ra>
